<compile_context>
chip_gen: v6e
topology: v6e:2x2x1
jax: 0.10.0
libtpu: 0.0.40
codegen_flags: <defaults>
</compile_context>

<pallas_src>
import jax
import jax.numpy as jnp
from jax.experimental import pallas as pl
from jax.experimental.pallas import tpu as pltpu


NEG_SLOPE = 0.05


def _leaky(v):
    # Single VALU max instead of compare+select (valid for 0 < slope < 1).
    return jnp.maximum(v, NEG_SLOPE * v)


def _make_kernel(d, input_dim, hidden, latent, batch_tile):
    """Kernel closure over the static problem dims (one batch tile per step)."""

    def kernel(x_ref, wadjT_ref, wstk_ref, bstk_ref, psum_ref):
        # x_ref: (Bt*d, input_dim) — all instances of this tile stacked row-wise.
        x = x_ref[...]

        def W(k, din, dout):
            return wstk_ref[k, :din, :dout]          # static ref slice (free)

        def B(k, dout):
            return bstk_ref[k, :, :dout]              # (1, dout), broadcasts over rows

        # ---------------- encoder: Linear -> LeakyReLU -> Linear -> LeakyReLU -> Linear
        h = _leaky(jnp.dot(x, W(0, input_dim, hidden),
                           preferred_element_type=jnp.float32) + B(0, hidden))
        h = _leaky(jnp.dot(h, W(1, hidden, hidden),
                           preferred_element_type=jnp.float32) + B(1, hidden))
        lat = jnp.dot(h, W(2, hidden, latent),
                      preferred_element_type=jnp.float32) + B(2, latent)

        # ---------------- adjacency mix: (I_Bt ⊗ w_adj.T) @ lat, unrolled over the
        # (small, static) batch tile.  w_adj.T is pre-transposed in the wrapper so
        # this is a plain last-dim-contracting matmul (no in-kernel XLU transpose).
        wadjT = wadjT_ref[...]
        parts = [
            jnp.dot(wadjT, lat[bi * d:(bi + 1) * d, :],
                    preferred_element_type=jnp.float32)
            for bi in range(batch_tile)
        ]
        mixed = parts[0] if batch_tile == 1 else jnp.concatenate(parts, axis=0)

        # ---------------- decoder (layer 1 kept as (w_adj.T @ latent) @ Wd1).
        h = _leaky(jnp.dot(mixed, W(3, latent, hidden),
                           preferred_element_type=jnp.float32) + B(3, hidden))
        h = _leaky(jnp.dot(h, W(4, hidden, hidden),
                           preferred_element_type=jnp.float32) + B(4, hidden))
        x_est = jnp.dot(h, W(5, hidden, input_dim),
                        preferred_element_type=jnp.float32) + B(5, input_dim)

        # ---------------- per-row squared-error sums; per-instance mean finished
        # in the wrapper (keeps the output blocked & parallel-safe across tiles).
        diff = x - x_est
        psum_ref[...] = jnp.sum(diff * diff, axis=1, keepdims=True)   # (Bt*d, 1)

    return kernel


def gae_forward(x, params, *, batch_tile=None):
    """x: (B, d, input_dim) or (d, input_dim) float32.

    Returns (loss, w_adj): loss is shape (B,) for batched input, scalar otherwise;
    w_adj is (d, d) (shared across the batch, as in the PyTorch module).
    """
    squeeze = x.ndim == 2
    if squeeze:
        x = x[None]
    x = x.astype(jnp.float32)
    B, d, input_dim = x.shape
    hidden = params["we1"].shape[1]
    latent = params["we3"].shape[1]

    # ---- w_adj built in plain JAX (64-element elementwise op); only its
    # transpose feeds the kernel.
    w = params["w"].astype(jnp.float32)
    w_adj = jnp.where(jnp.eye(d, dtype=bool), 0.0, w)
    w_adjT = w_adj.T

    # ---- batch tiling: aim for 2 grid steps so v7x megacore has work to split.
    if batch_tile is None:
        batch_tile = B if B <= 1 else pl.cdiv(B, 2)
    Bt = int(batch_tile)
    num_tiles = pl.cdiv(B, Bt)
    B_pad = num_tiles * Bt
    if B_pad != B:
        x = jnp.concatenate(
            [x, jnp.zeros((B_pad - B, d, input_dim), jnp.float32)], axis=0)
    rows = Bt * d                      # per-tile matmul row count (8-aligned here)
    x2d = x.reshape(B_pad * d, input_dim)

    # ---- pack the six Linear layers into two VMEM arrays (fewer tiny DMAs).
    max_io = max(input_dim, hidden, latent)

    def padw(a):
        a = a.astype(jnp.float32)
        return jnp.zeros((max_io, max_io), jnp.float32).at[:a.shape[0], :a.shape[1]].set(a)

    def padb(a):
        a = a.reshape(1, -1).astype(jnp.float32)
        return jnp.zeros((1, max_io), jnp.float32).at[:, :a.shape[1]].set(a)

    wstack = jnp.stack([padw(params[k]) for k in ("we1", "we2", "we3", "wd1", "wd2", "wd3")])
    bstack = jnp.stack([padb(params[k]) for k in ("be1", "be2", "be3", "bd1", "bd2", "bd3")])

    kernel = _make_kernel(d, input_dim, hidden, latent, Bt)

    vmem = pl.BlockSpec(memory_space=pltpu.MemorySpace.VMEM)
    grid_spec = pltpu.PrefetchScalarGridSpec(
        num_scalar_prefetch=0,
        grid=(num_tiles,),
        in_specs=[
            pl.BlockSpec((rows, input_dim), lambda t: (t, 0)),   # x, one batch tile per step
            vmem,                                                # w_adj.T  (resident)
            vmem,                                                # stacked weights (resident)
            vmem,                                                # stacked biases  (resident)
        ],
        out_specs=pl.BlockSpec((rows, 1), lambda t: (t, 0)),     # per-row sq-err sums
    )

    per_inst_flops = 2 * d * (
        input_dim * hidden + hidden * hidden + hidden * latent   # encoder
        + d * latent                                             # w_adj.T @ latent
        + latent * hidden + hidden * hidden + hidden * input_dim)  # decoder
    bytes_accessed = 4 * (x2d.size + d * d + wstack.size + bstack.size + B_pad * d)

    psums = pl.pallas_call(
        kernel,
        out_shape=jax.ShapeDtypeStruct((B_pad * d, 1), jnp.float32),
        grid_spec=grid_spec,
        compiler_params=pltpu.CompilerParams(
            # tiles are fully independent now (no in-kernel w_adj init) ->
            # safe to shard across v7x's two TensorCores.
            dimension_semantics=("parallel",),
        ),
        cost_estimate=pl.CostEstimate(
            flops=int(B_pad * per_inst_flops),
            transcendentals=0,
            bytes_accessed=int(bytes_accessed)),
    )(x2d, w_adjT, wstack, bstack)

    # finish the per-instance mean (tiny) in plain JAX
    loss = psums.reshape(B_pad, d).sum(axis=1)[:B] / float(d * input_dim)
    if squeeze:
        loss = loss[0]
    return loss, w_adj


def gae_reference(x, params):
    """Pure-JAX f32 reference of the PyTorch forward (single instance)."""
    def leaky(v):
        return jnp.where(v > 0, v, NEG_SLOPE * v)
    d = params["w"].shape[0]
    w_adj = (1.0 - jnp.eye(d, dtype=jnp.float32)) * params["w"]
    h = leaky(x @ params["we1"] + params["be1"])
    h = leaky(h @ params["we2"] + params["be2"])
    latent = h @ params["we3"] + params["be3"]
    mixed = w_adj.T @ latent
    h = leaky(mixed @ params["wd1"] + params["bd1"])
    h = leaky(h @ params["wd2"] + params["bd2"])
    x_est = h @ params["wd3"] + params["bd3"]
    loss = jnp.mean((x - x_est) ** 2)
    return loss, w_adj


def init_params(key, d, input_dim, latent_dim, hidden_dim):
    """Deterministic init mimicking nn.Linear default (uniform +/- 1/sqrt(fan_in)).
    Linear weights are stored as (in_features, out_features)."""
    dims = [
        ("we1", input_dim, hidden_dim), ("we2", hidden_dim, hidden_dim),
        ("we3", hidden_dim, latent_dim),
        ("wd1", latent_dim, hidden_dim), ("wd2", hidden_dim, hidden_dim),
        ("wd3", hidden_dim, input_dim),
    ]
    params = {}
    keys = jax.random.split(key, 2 * len(dims) + 1)
    for i, (name, fan_in, fan_out) in enumerate(dims):
        bound = 1.0 / jnp.sqrt(jnp.float32(fan_in))
        params[name] = jax.random.uniform(
            keys[2 * i], (fan_in, fan_out), jnp.float32, -bound, bound)
        params["b" + name[1:]] = jax.random.uniform(
            keys[2 * i + 1], (1, fan_out), jnp.float32, -bound, bound)
    # adjacency weight: uniform(-0.1, 0.1), shape (d, d)
    params["w"] = jax.random.uniform(keys[-1], (d, d), jnp.float32, -0.1, 0.1)
    return params


if __name__ == "__main__":
    d, input_dim, latent_dim, hidden_dim = 8, 16, 8, 32
    batch = 4

    key = jax.random.PRNGKey(0)
    k_x, k_p = jax.random.split(key)
    x = jax.random.normal(k_x, (batch, d, input_dim), jnp.float32)
    params = init_params(k_p, d, input_dim, latent_dim, hidden_dim)

    # batched path (2 tiles of 2 instances per pallas_call)
    loss, w_adj = gae_forward(x, params)
    jax.block_until_ready((loss, w_adj))
    assert loss.shape == (batch,)
    assert w_adj.shape == (d, d)

    # numeric check vs pure-JAX f32 reference (PyTorch module is f64 -> loose tol)
    ref_losses = jnp.stack([gae_reference(x[i], params)[0] for i in range(batch)])
    ref_wadj = gae_reference(x[0], params)[1]
    assert jnp.allclose(loss, ref_losses, rtol=1e-3, atol=1e-3), (loss, ref_losses)
    assert jnp.allclose(w_adj, ref_wadj, rtol=1e-5, atol=1e-6)

    # odd batch exercises the zero-pad path (B=3 -> padded to 4, 2 tiles of 2)
    loss3, _ = gae_forward(x[:3], params)
    jax.block_until_ready(loss3)
    assert loss3.shape == (3,)
    assert jnp.allclose(loss3, ref_losses[:3], rtol=1e-3, atol=1e-3)

    # unbatched path (matches the PyTorch module signature: x of shape (d, input_dim))
    loss0, w_adj0 = gae_forward(x[0], params)
    jax.block_until_ready((loss0, w_adj0))
    assert loss0.shape == ()
    assert w_adj0.shape == (d, d)
    assert jnp.allclose(loss0, ref_losses[0], rtol=1e-3, atol=1e-3)

    print("KERNEL_OK")
</pallas_src>

<mosaic_0001>
module attributes {stable_mosaic.version = 11 : i64} {
  func.func @kernel(%arg0: i32, %arg1: memref<16x16xf32, #tpu.memory_space<vmem>>, %arg2: memref<8x8xf32, #tpu.memory_space<vmem>>, %arg3: memref<6x32x32xf32, #tpu.memory_space<vmem>>, %arg4: memref<6x1x32xf32, #tpu.memory_space<vmem>>, %arg5: memref<16x1xf32, #tpu.memory_space<vmem>>) attributes {dimension_semantics = [#tpu.dimension_semantics<parallel>], iteration_bounds = array<i64: 2>, scalar_prefetch = 0 : i64, scratch_operands = 0 : i64, tpu.core_type = #tpu.core_type<tc>, window_params = [{transform_indices = @transform_0, window_bounds = array<i64: 16, 16>}, {pipeline_mode = #tpu.pipeline_mode<synchronous>, transform_indices = @transform_1, window_bounds = array<i64: 8, 8>}, {pipeline_mode = #tpu.pipeline_mode<synchronous>, transform_indices = @transform_2, window_bounds = array<i64: 6, 32, 32>}, {pipeline_mode = #tpu.pipeline_mode<synchronous>, transform_indices = @transform_3, window_bounds = array<i64: 6, 1, 32>}, {transform_indices = @transform_4, window_bounds = array<i64: 16, 1>}]} {
    %c0 = arith.constant 0 : index
    %c0_0 = arith.constant 0 : index
    %0 = vector.load %arg1[%c0, %c0_0] : memref<16x16xf32, #tpu.memory_space<vmem>>, vector<16x16xf32>
    %c0_1 = arith.constant 0 : index
    %c0_2 = arith.constant 0 : index
    %c0_3 = arith.constant 0 : index
    %1 = vector.load %arg3[%c0_1, %c0_2, %c0_3] : memref<6x32x32xf32, #tpu.memory_space<vmem>>, vector<1x16x32xf32>
    %2 = vector.shape_cast %1 : vector<1x16x32xf32> to vector<16x32xf32>
    %cst = arith.constant dense<0.000000e+00> : vector<16x32xf32>
    %3 = tpu.matmul %0, %2, %cst {dimension_numbers = #tpu.dot_dimension_numbers<[1], [0], [0], [1], [0, 0, 1, 1], [], []>} : vector<16x16xf32>, vector<16x32xf32>, vector<16x32xf32> -> vector<16x32xf32>
    %c0_4 = arith.constant 0 : index
    %c0_5 = arith.constant 0 : index
    %c0_6 = arith.constant 0 : index
    %4 = vector.load %arg4[%c0_4, %c0_5, %c0_6] : memref<6x1x32xf32, #tpu.memory_space<vmem>>, vector<1x1x32xf32>
    %5 = vector.shape_cast %4 : vector<1x1x32xf32> to vector<1x32xf32>
    %6 = vector.broadcast %5 : vector<1x32xf32> to vector<16x32xf32>
    %7 = arith.addf %3, %6 : vector<16x32xf32>
    %cst_7 = arith.constant 5.000000e-02 : f32
    %8 = vector.broadcast %cst_7 : f32 to vector<16x32xf32>
    %9 = arith.mulf %8, %7 : vector<16x32xf32>
    %10 = arith.maximumf %7, %9 : vector<16x32xf32>
    %c1 = arith.constant 1 : index
    %c0_8 = arith.constant 0 : index
    %c0_9 = arith.constant 0 : index
    %11 = vector.load %arg3[%c1, %c0_8, %c0_9] : memref<6x32x32xf32, #tpu.memory_space<vmem>>, vector<1x32x32xf32>
    %12 = vector.shape_cast %11 : vector<1x32x32xf32> to vector<32x32xf32>
    %cst_10 = arith.constant dense<0.000000e+00> : vector<16x32xf32>
    %13 = tpu.matmul %10, %12, %cst_10 {dimension_numbers = #tpu.dot_dimension_numbers<[1], [0], [0], [1], [0, 0, 1, 1], [], []>} : vector<16x32xf32>, vector<32x32xf32>, vector<16x32xf32> -> vector<16x32xf32>
    %c1_11 = arith.constant 1 : index
    %c0_12 = arith.constant 0 : index
    %c0_13 = arith.constant 0 : index
    %14 = vector.load %arg4[%c1_11, %c0_12, %c0_13] : memref<6x1x32xf32, #tpu.memory_space<vmem>>, vector<1x1x32xf32>
    %15 = vector.shape_cast %14 : vector<1x1x32xf32> to vector<1x32xf32>
    %16 = vector.broadcast %15 : vector<1x32xf32> to vector<16x32xf32>
    %17 = arith.addf %13, %16 : vector<16x32xf32>
    %cst_14 = arith.constant 5.000000e-02 : f32
    %18 = vector.broadcast %cst_14 : f32 to vector<16x32xf32>
    %19 = arith.mulf %18, %17 : vector<16x32xf32>
    %20 = arith.maximumf %17, %19 : vector<16x32xf32>
    %c2 = arith.constant 2 : index
    %c0_15 = arith.constant 0 : index
    %c0_16 = arith.constant 0 : index
    %21 = vector.load %arg3[%c2, %c0_15, %c0_16] : memref<6x32x32xf32, #tpu.memory_space<vmem>>, vector<1x32x8xf32>
    %22 = vector.shape_cast %21 : vector<1x32x8xf32> to vector<32x8xf32>
    %cst_17 = arith.constant dense<0.000000e+00> : vector<16x8xf32>
    %23 = tpu.matmul %20, %22, %cst_17 {dimension_numbers = #tpu.dot_dimension_numbers<[1], [0], [0], [1], [0, 0, 1, 1], [], []>} : vector<16x32xf32>, vector<32x8xf32>, vector<16x8xf32> -> vector<16x8xf32>
    %c2_18 = arith.constant 2 : index
    %c0_19 = arith.constant 0 : index
    %c0_20 = arith.constant 0 : index
    %24 = vector.load %arg4[%c2_18, %c0_19, %c0_20] : memref<6x1x32xf32, #tpu.memory_space<vmem>>, vector<1x1x8xf32>
    %25 = vector.shape_cast %24 : vector<1x1x8xf32> to vector<1x8xf32>
    %26 = vector.broadcast %25 : vector<1x8xf32> to vector<16x8xf32>
    %27 = arith.addf %23, %26 : vector<16x8xf32>
    %c0_21 = arith.constant 0 : index
    %c0_22 = arith.constant 0 : index
    %28 = vector.load %arg2[%c0_21, %c0_22] : memref<8x8xf32, #tpu.memory_space<vmem>>, vector<8x8xf32>
    %29 = vector.extract_strided_slice %27 {offsets = [0, 0], sizes = [8, 8], strides = [1, 1]} : vector<16x8xf32> to vector<8x8xf32>
    %cst_23 = arith.constant dense<0.000000e+00> : vector<8x8xf32>
    %30 = tpu.matmul %28, %29, %cst_23 {dimension_numbers = #tpu.dot_dimension_numbers<[1], [0], [0], [1], [0, 0, 1, 1], [], []>} : vector<8x8xf32>, vector<8x8xf32>, vector<8x8xf32> -> vector<8x8xf32>
    %31 = vector.extract_strided_slice %27 {offsets = [8, 0], sizes = [8, 8], strides = [1, 1]} : vector<16x8xf32> to vector<8x8xf32>
    %cst_24 = arith.constant dense<0.000000e+00> : vector<8x8xf32>
    %32 = tpu.matmul %28, %31, %cst_24 {dimension_numbers = #tpu.dot_dimension_numbers<[1], [0], [0], [1], [0, 0, 1, 1], [], []>} : vector<8x8xf32>, vector<8x8xf32>, vector<8x8xf32> -> vector<8x8xf32>
    %33 = tpu.concatenate %30, %32 in 0 : vector<8x8xf32>, vector<8x8xf32> -> vector<16x8xf32>
    %c3 = arith.constant 3 : index
    %c0_25 = arith.constant 0 : index
    %c0_26 = arith.constant 0 : index
    %34 = vector.load %arg3[%c3, %c0_25, %c0_26] : memref<6x32x32xf32, #tpu.memory_space<vmem>>, vector<1x8x32xf32>
    %35 = vector.shape_cast %34 : vector<1x8x32xf32> to vector<8x32xf32>
    %cst_27 = arith.constant dense<0.000000e+00> : vector<16x32xf32>
    %36 = tpu.matmul %33, %35, %cst_27 {dimension_numbers = #tpu.dot_dimension_numbers<[1], [0], [0], [1], [0, 0, 1, 1], [], []>} : vector<16x8xf32>, vector<8x32xf32>, vector<16x32xf32> -> vector<16x32xf32>
    %c3_28 = arith.constant 3 : index
    %c0_29 = arith.constant 0 : index
    %c0_30 = arith.constant 0 : index
    %37 = vector.load %arg4[%c3_28, %c0_29, %c0_30] : memref<6x1x32xf32, #tpu.memory_space<vmem>>, vector<1x1x32xf32>
    %38 = vector.shape_cast %37 : vector<1x1x32xf32> to vector<1x32xf32>
    %39 = vector.broadcast %38 : vector<1x32xf32> to vector<16x32xf32>
    %40 = arith.addf %36, %39 : vector<16x32xf32>
    %cst_31 = arith.constant 5.000000e-02 : f32
    %41 = vector.broadcast %cst_31 : f32 to vector<16x32xf32>
    %42 = arith.mulf %41, %40 : vector<16x32xf32>
    %43 = arith.maximumf %40, %42 : vector<16x32xf32>
    %c4 = arith.constant 4 : index
    %c0_32 = arith.constant 0 : index
    %c0_33 = arith.constant 0 : index
    %44 = vector.load %arg3[%c4, %c0_32, %c0_33] : memref<6x32x32xf32, #tpu.memory_space<vmem>>, vector<1x32x32xf32>
    %45 = vector.shape_cast %44 : vector<1x32x32xf32> to vector<32x32xf32>
    %cst_34 = arith.constant dense<0.000000e+00> : vector<16x32xf32>
    %46 = tpu.matmul %43, %45, %cst_34 {dimension_numbers = #tpu.dot_dimension_numbers<[1], [0], [0], [1], [0, 0, 1, 1], [], []>} : vector<16x32xf32>, vector<32x32xf32>, vector<16x32xf32> -> vector<16x32xf32>
    %c4_35 = arith.constant 4 : index
    %c0_36 = arith.constant 0 : index
    %c0_37 = arith.constant 0 : index
    %47 = vector.load %arg4[%c4_35, %c0_36, %c0_37] : memref<6x1x32xf32, #tpu.memory_space<vmem>>, vector<1x1x32xf32>
    %48 = vector.shape_cast %47 : vector<1x1x32xf32> to vector<1x32xf32>
    %49 = vector.broadcast %48 : vector<1x32xf32> to vector<16x32xf32>
    %50 = arith.addf %46, %49 : vector<16x32xf32>
    %cst_38 = arith.constant 5.000000e-02 : f32
    %51 = vector.broadcast %cst_38 : f32 to vector<16x32xf32>
    %52 = arith.mulf %51, %50 : vector<16x32xf32>
    %53 = arith.maximumf %50, %52 : vector<16x32xf32>
    %c5 = arith.constant 5 : index
    %c0_39 = arith.constant 0 : index
    %c0_40 = arith.constant 0 : index
    %54 = vector.load %arg3[%c5, %c0_39, %c0_40] : memref<6x32x32xf32, #tpu.memory_space<vmem>>, vector<1x32x16xf32>
    %55 = vector.shape_cast %54 : vector<1x32x16xf32> to vector<32x16xf32>
    %cst_41 = arith.constant dense<0.000000e+00> : vector<16x16xf32>
    %56 = tpu.matmul %53, %55, %cst_41 {dimension_numbers = #tpu.dot_dimension_numbers<[1], [0], [0], [1], [0, 0, 1, 1], [], []>} : vector<16x32xf32>, vector<32x16xf32>, vector<16x16xf32> -> vector<16x16xf32>
    %c5_42 = arith.constant 5 : index
    %c0_43 = arith.constant 0 : index
    %c0_44 = arith.constant 0 : index
    %57 = vector.load %arg4[%c5_42, %c0_43, %c0_44] : memref<6x1x32xf32, #tpu.memory_space<vmem>>, vector<1x1x16xf32>
    %58 = vector.shape_cast %57 : vector<1x1x16xf32> to vector<1x16xf32>
    %59 = vector.broadcast %58 : vector<1x16xf32> to vector<16x16xf32>
    %60 = arith.addf %56, %59 : vector<16x16xf32>
    %61 = arith.subf %0, %60 : vector<16x16xf32>
    %62 = arith.mulf %61, %61 : vector<16x16xf32>
    %cst_45 = arith.constant dense<0.000000e+00> : vector<16xf32>
    %63 = vector.multi_reduction <add>, %62, %cst_45 [1] : vector<16x16xf32> to vector<16xf32>
    %64 = vector.shape_cast %63 : vector<16xf32> to vector<16x1xf32>
    %c0_46 = arith.constant 0 : index
    %c0_47 = arith.constant 0 : index
    %65 = vector.load %arg5[%c0_46, %c0_47] : memref<16x1xf32, #tpu.memory_space<vmem>>, vector<16x1xf32>
    tpu.vector_store %arg5[%c0_46, %c0_47], %64 {strides = array<i32>} : memref<16x1xf32, #tpu.memory_space<vmem>>, vector<16x1xf32>,
    return
  }
  func.func @transform_0(%arg0: i32) -> (i32, i32) {
    %c0_i32 = arith.constant 0 : i32
    %c0_i32_0 = arith.constant 0 : i32
    return %arg0, %c0_i32 : i32, i32
  }
  func.func @transform_1(%arg0: i32) -> (i32, i32) {
    %c0_i32 = arith.constant 0 : i32
    %c0_i32_0 = arith.constant 0 : i32
    %c0_i32_1 = arith.constant 0 : i32
    return %c0_i32, %c0_i32_0 : i32, i32
  }
  func.func @transform_2(%arg0: i32) -> (i32, i32, i32) {
    %c0_i32 = arith.constant 0 : i32
    %c0_i32_0 = arith.constant 0 : i32
    %c0_i32_1 = arith.constant 0 : i32
    %c0_i32_2 = arith.constant 0 : i32
    return %c0_i32, %c0_i32_0, %c0_i32_1 : i32, i32, i32
  }
  func.func @transform_3(%arg0: i32) -> (i32, i32, i32) {
    %c0_i32 = arith.constant 0 : i32
    %c0_i32_0 = arith.constant 0 : i32
    %c0_i32_1 = arith.constant 0 : i32
    %c0_i32_2 = arith.constant 0 : i32
    return %c0_i32, %c0_i32_0, %c0_i32_1 : i32, i32, i32
  }
  func.func @transform_4(%arg0: i32) -> (i32, i32) {
    %c0_i32 = arith.constant 0 : i32
    %c0_i32_0 = arith.constant 0 : i32
    return %arg0, %c0_i32 : i32, i32
  }
}

</mosaic_0001>

<bundles_post_ra>
// kernel: tpu_custom_call.1
= control target key start
LH: loop header
LB: loop body
LE: loop exit
PB: predicated region body
PF: predicated region fallthrough
CT: control target
= control target key end

     0   :  { %9 = vsyncpa [#allocation3], 0  ;;  %s1249_s15 = smov 0   ;;  %s1335_s0 = inlined_call_operand.vmem [shape: f32[32,16], index: 0, kind: input, shape index: {}]   ;;  %s1336_s1 = inlined_call_operand.vmem [shape: f32[8,8], index: 1, kind: input, shape index: {}]   ;;  %s1337_s2 = inlined_call_operand.hbm [shape: f32[6,32,32], index: 2, kind: input, shape index: {}]   ;;  %s1338_s3 = inlined_call_operand.vmem [shape: f32[6,1,32], index: 3, kind: input, shape index: {}]   ;;  %s1339_s4 = inlined_call_operand.vmem [shape: f32[32,1], index: 4, kind: output, shape index: {}]  }
   0x1 LB: > { %s1019_s16 = sadd.s32 4294967295, %s1217_s15   ;;  %p1021_p0 = scmp.ge.s32.totalorder %s1217_s15, 1  ;;  %s1217_s15 = sphi %s1249_s15, %s15_s15  }
   0x2   : > { %p135_p1 = scmp.lt.s32.totalorder %s1217_s15, 3  ;;  %s1219_s17 = smov [#allocation2]  }
   0x3   : > { %s150_s18 = sshll.u32 %s1219_s17, 4  ;;  %p1261_p3 = scmp.eq.s32.totalorder %s1019_s16, 0  ;;  %s151_s18 = int_to_ptr.vmem [resolvable:$true] %s150_s18 }
   0x4   : > { %p1257_p2 = pnand %p1021_p0, %p135_p1  ;;  %s1192_s21 = scalar_lea.vmem %s151_s18, 3072 }
   0x5   : > { %p1193_p7 = scmp.ne.s32.totalorder %s151_s18, %s1192_s21  ;;  %p1200_p10 = scmp.lt.s32.totalorder %s151_s18, %s151_s18 }
   0x6   : > { %p1162_p4 = pneg %p1257_p2  ;;  %p1201_p11 = scmp.lt.s32.totalorder %s1192_s21, %s1192_s21 }
   0x8   : > { %p1163_p5 = pnand %p1261_p3, %p1162_p4  ;;  %p1202_p12 = por %p1201_p11, %p1200_p10 }
   0xa   : > { %p1183_p6 = pneg %p1163_p5 }
   0xc   : > { %p1195_p8 = pnand %p1193_p7, %p1183_p6 }
   0xe   : > { %p1196_p9 = pneg %p1195_p8 }
  0x10   : > { %p1203_p13 = pnand %p1202_p12, %p1196_p9 }
  0x12   : > { %1206 = shalt.err (!%p1203_p13)
}
  0x13   : > { %s1220_s22 = smov 128   ;;  %s1221_s23 = smov 8  }
  0x14   : > { %1165 = dma.hbm_to_vmem [thread:$0]  (!%p1163_p5), %s1337_s2, 3072, %s151_s18, [#allocation3], %s1220_s22, %s1220_s22, %s1221_s23  }
  0x15   : > { %178 = sbr.rel (%p1257_p2) target bundleno = 1580 (0x62c), region = 36 }
  0x1a   : > { %1212 = dma.done.wait (%p1261_p3), [#allocation3], 3072  }
  0x1b   : > { %1214 = vsyncadd (%p1261_p3), [#allocation3], 4294964224  ;;  %s1026_s26 = sshll.u32 %s1019_s16, 1  ;;  %vm227_vm0 = vcmask 130048   ;;  %v219_v0 = vld [vmem:[#allocation2 + $0x8] sm:$0xff]  ;;  %v218_v1 = vld [vmem:[#allocation2] sm:$0xff] }
  0x1c   : > { %p205_p0 = scmp.lt.s32.totalorder %s1026_s26, 3  ;;  %1092 = vmatprep.subr.mxu0 %v219_v0  ;;  %v317_v4 = vld [vmem:[#allocation2 + $0x38] sm:$0xff]  ;;  %v316_v5 = vld [vmem:[#allocation2 + $0x30] sm:$0xff]  ;;  %v315_v6 = vld [vmem:[#allocation2 + $0x28] sm:$0xff]  ;;  %vm326_vm1 = vcmask 261120   ;;  %v1222_v30 = vmov 0.0  }
  0x1d   : > { %1093 = vmatpush3.msra.mxu0 %v219_v0  ;;  %1099 = vmatprep.subr.mxu1 %v317_v4  ;;  %v314_v7 = vld [vmem:[#allocation2 + $0x20] sm:$0xff]  ;;  %v416_v17 = vld [vmem:[#allocation2 + $0x58] sm:$0xff]  ;;  %v415_v18 = vld [vmem:[#allocation2 + $0x50] sm:$0xff]  ;;  %vm1223_vm2 = vmmov 0   ;;  %vm507_vm3 = vcmask 64512   ;;  %vm948_vm4 = vcmask 7168  }
  0x1e   : > { %s1343_s26 = smov (!%p205_p0, %s1026_s26), 3  ;;  %1094 = vmatprep.subr.mxu0 %v218_v1  ;;  %1100 = vmatpush3.msra.mxu1 %v317_v4  ;;  %v1030_v8 = vld [vmem:[%s1338_s3] ss:$0 sm:$0xff]  ;;  %v414_v19 = vld [vmem:[#allocation2 + $0x48] sm:$0xff]  ;;  %v1034_v21 = vld [vmem:[%s1338_s3 + $0x1] ss:$0 sm:$0xff] }
  0x1f   : > { %s1027_s27 = sshll.u32 %s1343_s26, 3  ;;  %1095 = vmatpush3.msra.mxu0 %v218_v1  ;;  %1101 = vmatprep.subr.mxu1 %v316_v5  ;;  %v413_v20 = vld [vmem:[#allocation2 + $0x40] sm:$0xff]  ;;  %v750_v42 = vld [vmem:[#allocation2 + $0x98] sm:$0xff]  ;;  %v749_v43 = vld [vmem:[#allocation2 + $0x90] sm:$0xff] }
  0x20   : > { %s208_s30 = scalar_lea.vmem %s1335_s0, %s1027_s27  ;;  %1102 = vmatpush3.msra.mxu1 %v316_v5  ;;  %1110 = vmatprep.subr.mxu0 %v416_v17  ;;  %v1038_v31 = vld [vmem:[%s1338_s3 + $0x2] ss:$0 sm:$0xff]  ;;  %v748_v44 = vld [vmem:[#allocation2 + $0x88] sm:$0xff]  ;;  %v1044_v46 = vld [vmem:[%s1338_s3 + $0x3] ss:$0 sm:$0xff]  ;;  %s214_s22 = scalar_lea.vmem %s1339_s4, %s1027_s27 }
  0x21   : > { %v1286_v2 = vld [vmem:[%s208_s30] sm:$0xff]  ;;  %v1290_v3 = vld [vmem:[%s208_s30 + $0x8] sm:$0xff]  ;;  %1103 = vmatprep.subr.mxu1 %v315_v6  ;;  %v848_v55 = vld [vmem:[#allocation2 + $0xb8] sm:$0xff] }
  0x22   : > { %1096 = vmatprep.mubr.msk.f32.mxu0 %vm227_vm0, %v1286_v2  ;;  %1104 = vmatpush3.msra.mxu1 %v315_v6  ;;  %v506_v34 = vld [vmem:[%s1336_s1] sm:$0xff]  ;;  %v847_v56 = vld [vmem:[#allocation2 + $0xb0] sm:$0xff]  ;;  %v846_v57 = vld [vmem:[#allocation2 + $0xa8] sm:$0xff] }
  0x23   : > { %1097 = vmatmul.mubr.msk.f32.vlgmr.msra.gmra.mxu0 %vm227_vm0, %v1290_v3  ;;  %1105 = vmatprep.subr.mxu1 %v314_v7  ;;  %v652_v37 = vld [vmem:[#allocation2 + $0x60] sm:$0xff] }
  0x24   : > { %1106 = vmatpush3.msra.mxu1 %v314_v7  ;;  %1111 = vmatpush3.msra.mxu0 %v416_v17  ;;  %v747_v45 = vld [vmem:[#allocation2 + $0x80] sm:$0xff] }
  0x25   : > { %1112 = vmatprep.subr.mxu0 %v415_v18  ;;  %1121 = vmatprep.subr.mxu1 %v1222_v30  ;;  %v845_v58 = vld [vmem:[#allocation2 + $0xa0] sm:$0xff] }
  0x26   : > { %1113 = vmatpush3.msra.mxu0 %v415_v18  ;;  %v1048_v59 = vld [vmem:[%s1338_s3 + $0x4] ss:$0 sm:$0xff]  ;;  %v1052_v6 = vld [vmem:[%s1338_s3 + $0x5] ss:$0 sm:$0xff] }
  0x27   : > { %1114 = vmatprep.subr.mxu0 %v414_v19 }
  0x28   : > { %1115 = vmatpush3.msra.mxu0 %v414_v19 }
  0x29   : > { %1116 = vmatprep.subr.mxu0 %v413_v20 }
  0x2a   : > { %1117 = vmatpush3.msra.mxu0 %v413_v20 }
  0x2b   : > { %1126 = vmatprep.subr.mxu0 %v1222_v30 }
  0xe3   : > { %v1098_v9 = vpop.f32.mrf.mxu0 }
  0xe4   : > { %v306_v10 = vadd.f32 %v1098_v9, %v1030_v8 }
  0xe5   : > { %v300_v11 = vpop.f32.mrf.mxu0 }
  0xe6   : > { %v301_v12 = vadd.f32 %v1030_v8, %v300_v11  ;;  %v310_v13 = vmul.f32 0.05, %v306_v10 }
  0xe8   : > { %v309_v14 = vmul.f32 0.05, %v301_v12  ;;  %v312_v16 = vmax.f32 %v306_v10, %v310_v13 }
  0xea   : > { %v311_v15 = vmax.f32 %v301_v12, %v309_v14 }
  0xec   : > { %1107 = vmatprep.mubr.msk.f32.mxu1 %vm326_vm1, %v311_v15 }
  0xed   : > { %1108 = vmatmul.mubr.msk.f32.vlgmr.msra.gmra.mxu1 %vm326_vm1, %v312_v16 }
  0xee   : > { %1123 = vmatprep.mubr.msk.f32.mxu1 %vm1223_vm2, %v1222_v30 }
 0x1ad   : > { %v1109_v22 = vpop.f32.mrf.mxu1 }
 0x1ae   : > { %v405_v23 = vadd.f32 %v1109_v22, %v1034_v21 }
 0x1af   : > { %v399_v24 = vpop.f32.mrf.mxu1 }
 0x1b0   : > { %v400_v25 = vadd.f32 %v1034_v21, %v399_v24  ;;  %v409_v26 = vmul.f32 0.05, %v405_v23 }
 0x1b2   : > { %v408_v27 = vmul.f32 0.05, %v400_v25  ;;  %v411_v29 = vmax.f32 %v405_v23, %v409_v26 }
 0x1b4   : > { %v410_v28 = vmax.f32 %v400_v25, %v408_v27 }
 0x1b6   : > { %1118 = vmatprep.mubr.msk.f32.mxu0 %vm326_vm1, %v410_v28 }
 0x1b7   : > { %1119 = vmatmul.mubr.msk.f32.vlgmr.msra.gmra.mxu0 %vm326_vm1, %v411_v29 }
 0x1b8   : > { %1128 = vmatprep.mubr.msk.f32.mxu0 %vm1223_vm2, %v1222_v30 }
 0x277   : > { %v1120_v32 = vpop.f32.mrf.mxu0 }
 0x278   : > { %v503_v33 = vadd.f32 %v1120_v32, %v1038_v31 }
 0x279   : > { %v497_v35 = vpop.f32.mrf.mxu0 }
 0x27a   : > { %v498_v36 = vadd.f32 %v1038_v31, %v497_v35  ;;  %1127 = vmatpush3.msra.mxu0 %v503_v33 }
 0x27b   : > { %1129 = vmatmul.mubr.msk.f32.vlgmr.msra.gmra.mxu0 %vm507_vm3, %v506_v34  ;;  %1136 = vmatprep.subr.mxu0 %v750_v42 }
 0x27c   : > { %1122 = vmatpush3.msra.mxu1 %v498_v36  ;;  %1137 = vmatpush3.msra.mxu0 %v750_v42 }
 0x27d   : > { %1124 = vmatmul.mubr.msk.f32.vlgmr.msra.gmra.mxu1 %vm507_vm3, %v506_v34  ;;  %1131 = vmatprep.subr.mxu1 %v652_v37 }
 0x27e   : > { %1132 = vmatpush3.msra.mxu1 %v652_v37  ;;  %1138 = vmatprep.subr.mxu0 %v749_v43 }
 0x27f   : > { %1139 = vmatpush3.msra.mxu0 %v749_v43  ;;  %1147 = vmatprep.subr.mxu1 %v848_v55 }
 0x280   : > { %1140 = vmatprep.subr.mxu0 %v748_v44 }
 0x281   : > { %1141 = vmatpush3.msra.mxu0 %v748_v44 }
 0x282   : > { %1142 = vmatprep.subr.mxu0 %v747_v45 }
 0x283   : > { %1143 = vmatpush3.msra.mxu0 %v747_v45 }
 0x33b   : > { %v647_v38 = vpop.f32.mrf.mxu0 }
 0x33d   : > { %v577_v39 = vpop.f32.mrf.mxu1  ;;  %v1130_v40 = vpop.f32.mrf.mxu0 }
 0x33e   : > { %1133 = vmatprep.mubr.msk.f32.mxu1 %vm507_vm3, %v577_v39 }
 0x33f   : > { %1134 = vmatmul.mubr.msk.f32.vlgmr.msra.gmra.mxu1 %vm507_vm3, %v647_v38  ;;  %v1125_v41 = vpop.f32.mrf.mxu1 }
 0x340   : > { %1148 = vmatpush3.msra.mxu1 %v848_v55 }
 0x341   : > { %1149 = vmatprep.subr.mxu1 %v847_v56 }
 0x342   : > { %1150 = vmatpush3.msra.mxu1 %v847_v56 }
 0x343   : > { %1151 = vmatprep.subr.mxu1 %v846_v57 }
 0x344   : > { %1152 = vmatpush3.msra.mxu1 %v846_v57 }
 0x345   : > { %1153 = vmatprep.subr.mxu1 %v845_v58 }
 0x346   : > { %1154 = vmatpush3.msra.mxu1 %v845_v58 }
 0x3ff   : > { %v1135_v47 = vpop.f32.mrf.mxu1 }
 0x400   : > { %v739_v48 = vadd.f32 %v1135_v47, %v1044_v46 }
 0x401   : > { %v733_v49 = vpop.f32.mrf.mxu1 }
 0x402   : > { %v734_v50 = vadd.f32 %v1044_v46, %v733_v49  ;;  %v743_v51 = vmul.f32 0.05, %v739_v48 }
 0x404   : > { %v742_v52 = vmul.f32 0.05, %v734_v50  ;;  %v745_v54 = vmax.f32 %v739_v48, %v743_v51 }
 0x406   : > { %v744_v53 = vmax.f32 %v734_v50, %v742_v52 }
 0x408   : > { %1144 = vmatprep.mubr.msk.f32.mxu0 %vm326_vm1, %v744_v53 }
 0x409   : > { %1145 = vmatmul.mubr.msk.f32.vlgmr.msra.gmra.mxu0 %vm326_vm1, %v745_v54 }
 0x4c9   : > { %v1146_v60 = vpop.f32.mrf.mxu0 }
 0x4ca   : > { %v837_v61 = vadd.f32 %v1146_v60, %v1048_v59 }
 0x4cb   : > { %v831_v62 = vpop.f32.mrf.mxu0 }
 0x4cc   : > { %v832_v63 = vadd.f32 %v1048_v59, %v831_v62  ;;  %v841_v0 = vmul.f32 0.05, %v837_v61 }
 0x4ce   : > { %v840_v1 = vmul.f32 0.05, %v832_v63  ;;  %v843_v5 = vmax.f32 %v837_v61, %v841_v0 }
 0x4d0   : > { %v842_v4 = vmax.f32 %v832_v63, %v840_v1 }
 0x4d2   : > { %1155 = vmatprep.mubr.msk.f32.mxu1 %vm326_vm1, %v842_v4 }
 0x4d3   : > { %1156 = vmatmul.mubr.msk.f32.vlgmr.msra.gmra.mxu1 %vm326_vm1, %v843_v5 }
 0x593   : > { %v1157_v7 = vpop.f32.mrf.mxu1 }
 0x594   : > { %v935_v8 = vadd.f32 %v1157_v7, %v1052_v6 }
 0x595   : > { %v929_v9 = vpop.f32.mrf.mxu1 }
 0x596   : > { %v930_v10 = vadd.f32 %v1052_v6, %v929_v9  ;;  %v939_v11 = vsub.f32 %v1290_v3, %v935_v8 }
 0x598   : > { %v938_v12 = vsub.f32 %v1286_v2, %v930_v10  ;;  %v941_v15 = vmul.f32 %v939_v11, %v939_v11 }
 0x59a   : > { %v940_v13 = vmul.f32 %v938_v12, %v938_v12  ;;  %v945_v16 = vsel %vm227_vm0, %v941_v15, 0.0 }
 0x59c   : > { %v942_v14 = vsel %vm227_vm0, %v940_v13, 0.0 }
 0x59d   : > { %943 = vadd.xlane.f32.xlu0 %v942_v14 }
 0x5a1   : > { %946 = vadd.xlane.f32.xlu0 %v945_v16 }
 0x626   : > { %v944_v17 = vpop.xlane.xlu0 %943 }
 0x627   : > { %949 = vst.msk [vmem:[%s214_s22] sm:$0xff] %vm948_vm4, %v944_v17 }
 0x62a   : > { %v947_v18 = vpop.xlane.xlu0 %946 }
 0x62b   : > { %950 = vst.msk [vmem:[%s214_s22 + $0x8] sm:$0xff] %vm948_vm4, %v947_v18 }
 0x62c PF: > { %s15_s15 = sadd.s32 1, %s1217_s15  }
 0x62d   : > { %p12_p1 = scmp.ge.s32.totalorder %s15_s15, 4  }
 0x62f   :  { %14 = sbr.rel (!%p12_p1) target bundleno = 1 (0x1), region = 81 }
 0x634   :  { %973 = vsyncpa [#allocation3], 1 }
 0x635   :  { %975 = vsyncpa [#allocation3 + $0x1], 1 }

</bundles_post_ra>
